<compile_context>
chip_gen: v6e
topology: v6e:2x2x1
jax: 0.10.0
libtpu: 0.0.40
codegen_flags: <defaults>
</compile_context>

<pallas_src>
import functools

import jax
import jax.numpy as jnp
from jax.experimental import pallas as pl
from jax.experimental.pallas import tpu as pltpu

_LANE = 128
_SUBLANE = 8
_EPS = 1e-5
_SLOPE = 0.2


def _round_up(n, m):
    return ((n + m - 1) // m) * m


def residual_kernel(x_ref, w_ref, gb_ref, o_ref, *, batch):
    """x_ref:(B_pad,F_pad) f32, w_ref:(4,F_pad,F_pad) bf16, gb_ref:(8,F_pad) f32."""
    b_pad = x_ref.shape[0]
    n_layers = w_ref.shape[0]
    inv_b = jnp.float32(1.0 / batch)

    gb = gb_ref[...]  # (2*n_layers, F_pad) f32 -- a single vreg-sized load

    need_row_mask = b_pad != batch
    if need_row_mask:
        row_ids = jax.lax.broadcasted_iota(jnp.int32, (b_pad, 1), 0)
        row_mask = row_ids < batch

    def matmul(h, layer):
        # bf16 operands, f32 MXU accumulation.
        return jnp.dot(
            h.astype(jnp.bfloat16),
            w_ref[layer],
            preferred_element_type=jnp.float32,
        )

    def bn_lrelu(h, layer):
        # Training-mode BatchNorm1d: batch mean + biased batch variance,
        # one-pass stats; gamma*rsqrt folded into one per-feature scale.
        gamma = gb[layer : layer + 1, :]
        beta = gb[n_layers + layer : n_layers + layer + 1, :]
        mean = jnp.sum(h, axis=0, keepdims=True) * inv_b
        mean_sq = jnp.sum(h * h, axis=0, keepdims=True) * inv_b
        var = jnp.maximum(mean_sq - mean * mean, 0.0)
        scale = gamma * jax.lax.rsqrt(var + _EPS)
        shift = beta - mean * scale
        y = h * scale + shift
        y = jnp.where(y > 0, y, _SLOPE * y)  # LeakyReLU(0.2)
        if need_row_mask:
            # Keep padded batch rows at zero so downstream batch sums stay exact.
            y = jnp.where(row_mask, y, 0.0)
        return y

    x = x_ref[...].astype(jnp.float32)

    # reduce_expand: (Linear -> BN -> LeakyReLU) x 3
    h = bn_lrelu(matmul(x, 0), 0)
    h = bn_lrelu(matmul(h, 1), 1)
    h = bn_lrelu(matmul(h, 2), 2)

    # residual add (padded lanes of both operands are zero)
    residual = h + x

    # final_layer: Linear -> BN -> LeakyReLU
    out = bn_lrelu(matmul(residual, 3), 3)

    o_ref[...] = out.astype(o_ref.dtype)


@functools.partial(jax.jit, static_argnames=("out_feat",))
def residual_forward(x, w_all, gb, out_feat):
    """x: (B, in_feat) f32. w_all: (4, F_pad, F_pad) bf16. gb: (8, F_pad) f32."""
    B, in_feat = x.shape
    f_pad = w_all.shape[-1]
    b_pad = _round_up(max(B, _SUBLANE), _SUBLANE)

    # Lane-dense, sublane-aligned activation slab (zero pad is preserved by the
    # bias-free matmuls and zero-padded gamma/beta).
    x_pad = jnp.zeros((b_pad, f_pad), jnp.float32).at[:B, :in_feat].set(x)

    out_pad = pl.pallas_call(
        functools.partial(residual_kernel, batch=B),
        out_shape=jax.ShapeDtypeStruct((b_pad, f_pad), x.dtype),
        in_specs=[pl.BlockSpec(memory_space=pltpu.VMEM)] * 3,
        out_specs=pl.BlockSpec(memory_space=pltpu.VMEM),
        compiler_params=pltpu.CompilerParams(
            vmem_limit_bytes=32 * 1024 * 1024,  # explicit; safe on v5e/v6e/v7x
        ),
    )(x_pad, w_all, gb)

    return out_pad[:B, :out_feat]


def init_params(key, in_feat, out_feat):
    """Logical (unpadded) params.  Linear weights stored pre-transposed (in,out).

    Linear biases are intentionally omitted: they are exactly cancelled by the
    following training-mode BatchNorm (mean subtraction absorbs them).
    BatchNorm affine init matches PyTorch defaults: gamma=1, beta=0.
    """
    half = in_feat // 2
    dims = [(in_feat, half), (half, half), (half, in_feat), (in_feat, out_feat)]
    params = {}
    for idx, (din, dout) in enumerate(dims, start=1):
        key, kw = jax.random.split(key)
        bound = 1.0 / jnp.sqrt(din)
        params[f"w{idx}"] = jax.random.uniform(
            kw, (din, dout), jnp.float32, minval=-bound, maxval=bound
        )
        params[f"g{idx}"] = jnp.ones((dout,), jnp.float32)
        params[f"be{idx}"] = jnp.zeros((dout,), jnp.float32)
    return params


def pack_params(params, in_feat, out_feat):
    """Pad every feature dim to a lane multiple and pack into two arrays:
    w_all (4, F_pad, F_pad) bf16 and gb (8, F_pad) f32 (rows 0-3 gamma, 4-7 beta).
    """
    half = in_feat // 2
    dims = [(in_feat, half), (half, half), (half, in_feat), (in_feat, out_feat)]
    f_pad = _round_up(max(in_feat, half, out_feat), _LANE)
    n_layers = len(dims)

    w_all = jnp.zeros((n_layers, f_pad, f_pad), jnp.bfloat16)
    gb = jnp.zeros((2 * n_layers, f_pad), jnp.float32)
    for l, (din, dout) in enumerate(dims):
        w_all = w_all.at[l, :din, :dout].set(
            params[f"w{l + 1}"].astype(jnp.bfloat16)
        )
        gb = gb.at[l, :dout].set(params[f"g{l + 1}"])
        gb = gb.at[n_layers + l, :dout].set(params[f"be{l + 1}"])
    return w_all, gb


def residual_reference(x, params):
    """Pure-JAX reference with the same bf16-matmul / f32-BN math path."""

    def mm(h, w):
        return jnp.dot(
            h.astype(jnp.bfloat16),
            w.astype(jnp.bfloat16),
            preferred_element_type=jnp.float32,
        )

    def bn_lrelu(h, g, b):
        mean = jnp.mean(h, axis=0, keepdims=True)
        var = jnp.maximum(jnp.mean(h * h, axis=0, keepdims=True) - mean * mean, 0.0)
        y = (h - mean) * jax.lax.rsqrt(var + _EPS) * g + b
        return jnp.where(y > 0, y, _SLOPE * y)

    h = bn_lrelu(mm(x, params["w1"]), params["g1"], params["be1"])
    h = bn_lrelu(mm(h, params["w2"]), params["g2"], params["be2"])
    h = bn_lrelu(mm(h, params["w3"]), params["g3"], params["be3"])
    residual = h + x
    return bn_lrelu(mm(residual, params["w4"]), params["g4"], params["be4"])


if __name__ == "__main__":
    in_feat, out_feat, batch = 32, 16, 8

    key = jax.random.PRNGKey(0)
    key, kx = jax.random.split(key)
    x = jax.random.normal(kx, (batch, in_feat), jnp.float32)

    params = init_params(key, in_feat, out_feat)
    w_all, gb = pack_params(params, in_feat, out_feat)

    out = residual_forward(x, w_all, gb, out_feat)
    jax.block_until_ready(out)

    assert out.shape == (batch, out_feat)
    assert out.dtype == jnp.float32
    assert bool(jnp.all(jnp.isfinite(out)))

    ref = residual_reference(x, params)
    max_err = float(jnp.max(jnp.abs(out - ref)))
    assert max_err < 5e-2, f"kernel/reference mismatch: {max_err}"

    print("KERNEL_OK")
</pallas_src>

<mosaic_0001>
module attributes {stable_mosaic.version = 11 : i64} {
  func.func @residual_kernel(%arg0: memref<8x128xf32, #tpu.memory_space<vmem>>, %arg1: memref<4x128x128xbf16, #tpu.memory_space<vmem>>, %arg2: memref<8x128xf32, #tpu.memory_space<vmem>>, %arg3: memref<8x128xf32, #tpu.memory_space<vmem>>) attributes {dimension_semantics = [], scalar_prefetch = 0 : i64, scratch_operands = 0 : i64, tpu.core_type = #tpu.core_type<tc>} {
    %c0 = arith.constant 0 : index
    %c0_0 = arith.constant 0 : index
    %0 = vector.load %arg2[%c0, %c0_0] : memref<8x128xf32, #tpu.memory_space<vmem>>, vector<8x128xf32>
    %c0_1 = arith.constant 0 : index
    %c0_2 = arith.constant 0 : index
    %1 = vector.load %arg0[%c0_1, %c0_2] : memref<8x128xf32, #tpu.memory_space<vmem>>, vector<8x128xf32>
    %2 = arith.truncf %1 : vector<8x128xf32> to vector<8x128xbf16>
    %c0_3 = arith.constant 0 : index
    %c0_4 = arith.constant 0 : index
    %c0_5 = arith.constant 0 : index
    %3 = vector.load %arg1[%c0_3, %c0_4, %c0_5] : memref<4x128x128xbf16, #tpu.memory_space<vmem>>, vector<1x128x128xbf16>
    %4 = vector.shape_cast %3 : vector<1x128x128xbf16> to vector<128x128xbf16>
    %cst = arith.constant dense<0.000000e+00> : vector<8x128xf32>
    %5 = tpu.matmul %2, %4, %cst {dimension_numbers = #tpu.dot_dimension_numbers<[1], [0], [0], [1], [0, 0, 1, 1], [], []>} : vector<8x128xbf16>, vector<128x128xbf16>, vector<8x128xf32> -> vector<8x128xf32>
    %6 = vector.extract_strided_slice %0 {offsets = [0, 0], sizes = [1, 128], strides = [1, 1]} : vector<8x128xf32> to vector<1x128xf32>
    %7 = vector.extract_strided_slice %0 {offsets = [4, 0], sizes = [1, 128], strides = [1, 1]} : vector<8x128xf32> to vector<1x128xf32>
    %cst_6 = arith.constant dense<0.000000e+00> : vector<128xf32>
    %8 = vector.multi_reduction <add>, %5, %cst_6 [0] : vector<8x128xf32> to vector<128xf32>
    %9 = vector.shape_cast %8 : vector<128xf32> to vector<1x128xf32>
    %cst_7 = arith.constant 1.250000e-01 : f32
    %10 = vector.broadcast %cst_7 : f32 to vector<1x128xf32>
    %11 = arith.mulf %9, %10 : vector<1x128xf32>
    %12 = arith.mulf %5, %5 : vector<8x128xf32>
    %cst_8 = arith.constant dense<0.000000e+00> : vector<128xf32>
    %13 = vector.multi_reduction <add>, %12, %cst_8 [0] : vector<8x128xf32> to vector<128xf32>
    %14 = vector.shape_cast %13 : vector<128xf32> to vector<1x128xf32>
    %cst_9 = arith.constant 1.250000e-01 : f32
    %15 = vector.broadcast %cst_9 : f32 to vector<1x128xf32>
    %16 = arith.mulf %14, %15 : vector<1x128xf32>
    %17 = arith.mulf %11, %11 : vector<1x128xf32>
    %18 = arith.subf %16, %17 : vector<1x128xf32>
    %cst_10 = arith.constant 0.000000e+00 : f32
    %19 = vector.broadcast %cst_10 : f32 to vector<1x128xf32>
    %20 = arith.maximumf %18, %19 : vector<1x128xf32>
    %cst_11 = arith.constant 9.99999974E-6 : f32
    %21 = vector.broadcast %cst_11 : f32 to vector<1x128xf32>
    %22 = arith.addf %20, %21 : vector<1x128xf32>
    %23 = math.rsqrt %22 : vector<1x128xf32>
    %24 = arith.mulf %6, %23 : vector<1x128xf32>
    %25 = arith.mulf %11, %24 : vector<1x128xf32>
    %26 = arith.subf %7, %25 : vector<1x128xf32>
    %27 = vector.broadcast %24 : vector<1x128xf32> to vector<8x128xf32>
    %28 = arith.mulf %5, %27 : vector<8x128xf32>
    %29 = vector.broadcast %26 : vector<1x128xf32> to vector<8x128xf32>
    %30 = arith.addf %28, %29 : vector<8x128xf32>
    %cst_12 = arith.constant 0.000000e+00 : f32
    %31 = vector.broadcast %cst_12 : f32 to vector<8x128xf32>
    %32 = arith.cmpf ogt, %30, %31 : vector<8x128xf32>
    %cst_13 = arith.constant 2.000000e-01 : f32
    %33 = vector.broadcast %cst_13 : f32 to vector<8x128xf32>
    %34 = arith.mulf %33, %30 : vector<8x128xf32>
    %35 = arith.select %32, %30, %34 : vector<8x128xi1>, vector<8x128xf32>
    %36 = arith.truncf %35 : vector<8x128xf32> to vector<8x128xbf16>
    %c1 = arith.constant 1 : index
    %c0_14 = arith.constant 0 : index
    %c0_15 = arith.constant 0 : index
    %37 = vector.load %arg1[%c1, %c0_14, %c0_15] : memref<4x128x128xbf16, #tpu.memory_space<vmem>>, vector<1x128x128xbf16>
    %38 = vector.shape_cast %37 : vector<1x128x128xbf16> to vector<128x128xbf16>
    %cst_16 = arith.constant dense<0.000000e+00> : vector<8x128xf32>
    %39 = tpu.matmul %36, %38, %cst_16 {dimension_numbers = #tpu.dot_dimension_numbers<[1], [0], [0], [1], [0, 0, 1, 1], [], []>} : vector<8x128xbf16>, vector<128x128xbf16>, vector<8x128xf32> -> vector<8x128xf32>
    %40 = vector.extract_strided_slice %0 {offsets = [1, 0], sizes = [1, 128], strides = [1, 1]} : vector<8x128xf32> to vector<1x128xf32>
    %41 = vector.extract_strided_slice %0 {offsets = [5, 0], sizes = [1, 128], strides = [1, 1]} : vector<8x128xf32> to vector<1x128xf32>
    %cst_17 = arith.constant dense<0.000000e+00> : vector<128xf32>
    %42 = vector.multi_reduction <add>, %39, %cst_17 [0] : vector<8x128xf32> to vector<128xf32>
    %43 = vector.shape_cast %42 : vector<128xf32> to vector<1x128xf32>
    %cst_18 = arith.constant 1.250000e-01 : f32
    %44 = vector.broadcast %cst_18 : f32 to vector<1x128xf32>
    %45 = arith.mulf %43, %44 : vector<1x128xf32>
    %46 = arith.mulf %39, %39 : vector<8x128xf32>
    %cst_19 = arith.constant dense<0.000000e+00> : vector<128xf32>
    %47 = vector.multi_reduction <add>, %46, %cst_19 [0] : vector<8x128xf32> to vector<128xf32>
    %48 = vector.shape_cast %47 : vector<128xf32> to vector<1x128xf32>
    %cst_20 = arith.constant 1.250000e-01 : f32
    %49 = vector.broadcast %cst_20 : f32 to vector<1x128xf32>
    %50 = arith.mulf %48, %49 : vector<1x128xf32>
    %51 = arith.mulf %45, %45 : vector<1x128xf32>
    %52 = arith.subf %50, %51 : vector<1x128xf32>
    %cst_21 = arith.constant 0.000000e+00 : f32
    %53 = vector.broadcast %cst_21 : f32 to vector<1x128xf32>
    %54 = arith.maximumf %52, %53 : vector<1x128xf32>
    %cst_22 = arith.constant 9.99999974E-6 : f32
    %55 = vector.broadcast %cst_22 : f32 to vector<1x128xf32>
    %56 = arith.addf %54, %55 : vector<1x128xf32>
    %57 = math.rsqrt %56 : vector<1x128xf32>
    %58 = arith.mulf %40, %57 : vector<1x128xf32>
    %59 = arith.mulf %45, %58 : vector<1x128xf32>
    %60 = arith.subf %41, %59 : vector<1x128xf32>
    %61 = vector.broadcast %58 : vector<1x128xf32> to vector<8x128xf32>
    %62 = arith.mulf %39, %61 : vector<8x128xf32>
    %63 = vector.broadcast %60 : vector<1x128xf32> to vector<8x128xf32>
    %64 = arith.addf %62, %63 : vector<8x128xf32>
    %cst_23 = arith.constant 0.000000e+00 : f32
    %65 = vector.broadcast %cst_23 : f32 to vector<8x128xf32>
    %66 = arith.cmpf ogt, %64, %65 : vector<8x128xf32>
    %cst_24 = arith.constant 2.000000e-01 : f32
    %67 = vector.broadcast %cst_24 : f32 to vector<8x128xf32>
    %68 = arith.mulf %67, %64 : vector<8x128xf32>
    %69 = arith.select %66, %64, %68 : vector<8x128xi1>, vector<8x128xf32>
    %70 = arith.truncf %69 : vector<8x128xf32> to vector<8x128xbf16>
    %c2 = arith.constant 2 : index
    %c0_25 = arith.constant 0 : index
    %c0_26 = arith.constant 0 : index
    %71 = vector.load %arg1[%c2, %c0_25, %c0_26] : memref<4x128x128xbf16, #tpu.memory_space<vmem>>, vector<1x128x128xbf16>
    %72 = vector.shape_cast %71 : vector<1x128x128xbf16> to vector<128x128xbf16>
    %cst_27 = arith.constant dense<0.000000e+00> : vector<8x128xf32>
    %73 = tpu.matmul %70, %72, %cst_27 {dimension_numbers = #tpu.dot_dimension_numbers<[1], [0], [0], [1], [0, 0, 1, 1], [], []>} : vector<8x128xbf16>, vector<128x128xbf16>, vector<8x128xf32> -> vector<8x128xf32>
    %74 = vector.extract_strided_slice %0 {offsets = [2, 0], sizes = [1, 128], strides = [1, 1]} : vector<8x128xf32> to vector<1x128xf32>
    %75 = vector.extract_strided_slice %0 {offsets = [6, 0], sizes = [1, 128], strides = [1, 1]} : vector<8x128xf32> to vector<1x128xf32>
    %cst_28 = arith.constant dense<0.000000e+00> : vector<128xf32>
    %76 = vector.multi_reduction <add>, %73, %cst_28 [0] : vector<8x128xf32> to vector<128xf32>
    %77 = vector.shape_cast %76 : vector<128xf32> to vector<1x128xf32>
    %cst_29 = arith.constant 1.250000e-01 : f32
    %78 = vector.broadcast %cst_29 : f32 to vector<1x128xf32>
    %79 = arith.mulf %77, %78 : vector<1x128xf32>
    %80 = arith.mulf %73, %73 : vector<8x128xf32>
    %cst_30 = arith.constant dense<0.000000e+00> : vector<128xf32>
    %81 = vector.multi_reduction <add>, %80, %cst_30 [0] : vector<8x128xf32> to vector<128xf32>
    %82 = vector.shape_cast %81 : vector<128xf32> to vector<1x128xf32>
    %cst_31 = arith.constant 1.250000e-01 : f32
    %83 = vector.broadcast %cst_31 : f32 to vector<1x128xf32>
    %84 = arith.mulf %82, %83 : vector<1x128xf32>
    %85 = arith.mulf %79, %79 : vector<1x128xf32>
    %86 = arith.subf %84, %85 : vector<1x128xf32>
    %cst_32 = arith.constant 0.000000e+00 : f32
    %87 = vector.broadcast %cst_32 : f32 to vector<1x128xf32>
    %88 = arith.maximumf %86, %87 : vector<1x128xf32>
    %cst_33 = arith.constant 9.99999974E-6 : f32
    %89 = vector.broadcast %cst_33 : f32 to vector<1x128xf32>
    %90 = arith.addf %88, %89 : vector<1x128xf32>
    %91 = math.rsqrt %90 : vector<1x128xf32>
    %92 = arith.mulf %74, %91 : vector<1x128xf32>
    %93 = arith.mulf %79, %92 : vector<1x128xf32>
    %94 = arith.subf %75, %93 : vector<1x128xf32>
    %95 = vector.broadcast %92 : vector<1x128xf32> to vector<8x128xf32>
    %96 = arith.mulf %73, %95 : vector<8x128xf32>
    %97 = vector.broadcast %94 : vector<1x128xf32> to vector<8x128xf32>
    %98 = arith.addf %96, %97 : vector<8x128xf32>
    %cst_34 = arith.constant 0.000000e+00 : f32
    %99 = vector.broadcast %cst_34 : f32 to vector<8x128xf32>
    %100 = arith.cmpf ogt, %98, %99 : vector<8x128xf32>
    %cst_35 = arith.constant 2.000000e-01 : f32
    %101 = vector.broadcast %cst_35 : f32 to vector<8x128xf32>
    %102 = arith.mulf %101, %98 : vector<8x128xf32>
    %103 = arith.select %100, %98, %102 : vector<8x128xi1>, vector<8x128xf32>
    %104 = arith.addf %103, %1 : vector<8x128xf32>
    %105 = arith.truncf %104 : vector<8x128xf32> to vector<8x128xbf16>
    %c3 = arith.constant 3 : index
    %c0_36 = arith.constant 0 : index
    %c0_37 = arith.constant 0 : index
    %106 = vector.load %arg1[%c3, %c0_36, %c0_37] : memref<4x128x128xbf16, #tpu.memory_space<vmem>>, vector<1x128x128xbf16>
    %107 = vector.shape_cast %106 : vector<1x128x128xbf16> to vector<128x128xbf16>
    %cst_38 = arith.constant dense<0.000000e+00> : vector<8x128xf32>
    %108 = tpu.matmul %105, %107, %cst_38 {dimension_numbers = #tpu.dot_dimension_numbers<[1], [0], [0], [1], [0, 0, 1, 1], [], []>} : vector<8x128xbf16>, vector<128x128xbf16>, vector<8x128xf32> -> vector<8x128xf32>
    %109 = vector.extract_strided_slice %0 {offsets = [3, 0], sizes = [1, 128], strides = [1, 1]} : vector<8x128xf32> to vector<1x128xf32>
    %110 = vector.extract_strided_slice %0 {offsets = [7, 0], sizes = [1, 128], strides = [1, 1]} : vector<8x128xf32> to vector<1x128xf32>
    %cst_39 = arith.constant dense<0.000000e+00> : vector<128xf32>
    %111 = vector.multi_reduction <add>, %108, %cst_39 [0] : vector<8x128xf32> to vector<128xf32>
    %112 = vector.shape_cast %111 : vector<128xf32> to vector<1x128xf32>
    %cst_40 = arith.constant 1.250000e-01 : f32
    %113 = vector.broadcast %cst_40 : f32 to vector<1x128xf32>
    %114 = arith.mulf %112, %113 : vector<1x128xf32>
    %115 = arith.mulf %108, %108 : vector<8x128xf32>
    %cst_41 = arith.constant dense<0.000000e+00> : vector<128xf32>
    %116 = vector.multi_reduction <add>, %115, %cst_41 [0] : vector<8x128xf32> to vector<128xf32>
    %117 = vector.shape_cast %116 : vector<128xf32> to vector<1x128xf32>
    %cst_42 = arith.constant 1.250000e-01 : f32
    %118 = vector.broadcast %cst_42 : f32 to vector<1x128xf32>
    %119 = arith.mulf %117, %118 : vector<1x128xf32>
    %120 = arith.mulf %114, %114 : vector<1x128xf32>
    %121 = arith.subf %119, %120 : vector<1x128xf32>
    %cst_43 = arith.constant 0.000000e+00 : f32
    %122 = vector.broadcast %cst_43 : f32 to vector<1x128xf32>
    %123 = arith.maximumf %121, %122 : vector<1x128xf32>
    %cst_44 = arith.constant 9.99999974E-6 : f32
    %124 = vector.broadcast %cst_44 : f32 to vector<1x128xf32>
    %125 = arith.addf %123, %124 : vector<1x128xf32>
    %126 = math.rsqrt %125 : vector<1x128xf32>
    %127 = arith.mulf %109, %126 : vector<1x128xf32>
    %128 = arith.mulf %114, %127 : vector<1x128xf32>
    %129 = arith.subf %110, %128 : vector<1x128xf32>
    %130 = vector.broadcast %127 : vector<1x128xf32> to vector<8x128xf32>
    %131 = arith.mulf %108, %130 : vector<8x128xf32>
    %132 = vector.broadcast %129 : vector<1x128xf32> to vector<8x128xf32>
    %133 = arith.addf %131, %132 : vector<8x128xf32>
    %cst_45 = arith.constant 0.000000e+00 : f32
    %134 = vector.broadcast %cst_45 : f32 to vector<8x128xf32>
    %135 = arith.cmpf ogt, %133, %134 : vector<8x128xf32>
    %cst_46 = arith.constant 2.000000e-01 : f32
    %136 = vector.broadcast %cst_46 : f32 to vector<8x128xf32>
    %137 = arith.mulf %136, %133 : vector<8x128xf32>
    %138 = arith.select %135, %133, %137 : vector<8x128xi1>, vector<8x128xf32>
    %c0_47 = arith.constant 0 : index
    %c0_48 = arith.constant 0 : index
    %139 = vector.load %arg3[%c0_47, %c0_48] : memref<8x128xf32, #tpu.memory_space<vmem>>, vector<8x128xf32>
    tpu.vector_store %arg3[%c0_47, %c0_48], %138 {strides = array<i32>} : memref<8x128xf32, #tpu.memory_space<vmem>>, vector<8x128xf32>,
    return
  }
}

</mosaic_0001>

<bundles_post_ra>
// kernel: residual_forward.1
= control target key start
LH: loop header
LB: loop body
LE: loop exit
PB: predicated region body
PF: predicated region fallthrough
CT: control target
= control target key end

     0   :  { %8 = vsyncpa [#allocation3], 0  ;;  %s969_s0 = inlined_call_operand.vmem [shape: f32[8,128], index: 0, kind: input, shape index: {}]   ;;  %s970_s1 = inlined_call_operand.hbm [shape: bf16[4,128,128], index: 1, kind: input, shape index: {}]   ;;  %s971_s2 = inlined_call_operand.vmem [shape: f32[8,128], index: 2, kind: input, shape index: {}]   ;;  %s972_s3 = inlined_call_operand.hbm [shape: f32[8,128], index: 3, kind: output, shape index: {}]  }
   0x1   :  { %9 = vsyncpa [#allocation4], 0  ;;  %s866_s12 = smov [#allocation2]  }
   0x2   :  { %s17_s13 = sshll.u32 %s866_s12, 4  ;;  %s18_s13 = int_to_ptr.vmem [resolvable:$true] %s17_s13 }
   0x3   :  { %s830_s14 = scalar_lea.vmem %s18_s13, 4096  ;;  %p835_p1 = scmp.lt.s32.totalorder %s18_s13, %s18_s13 }
   0x4   :  { %p831_p0 = scmp.ne.s32.totalorder %s18_s13, %s830_s14  ;;  %p836_p2 = scmp.lt.s32.totalorder %s830_s14, %s830_s14 }
   0x6   :  { %p837_p3 = por %p836_p2, %p835_p1 }
   0x8   :  { %p838_p4 = pnand %p837_p3, %p831_p0 }
   0xa   :  { %841 = shalt.err (!%p838_p4)
}
   0xb   :  { %s867_s15 = smov 64   ;;  %s868_s16 = smov 4  }
   0xc   :  { %23 = dma.hbm_to_vmem [thread:$0]  %s970_s1, 4096, %s18_s13, [#allocation3], %s867_s15, %s867_s15, %s868_s16  }
   0xd   :  { %862 = dma.done.wait [#allocation3], 4096  }
   0xe   :  { %863 = vsyncadd [#allocation3], 4294963200  ;;  %v869_v0 = vmov 0.0   ;;  %vm870_vm0 = vmmov 0   ;;  %v782_v1 = vld [vmem:[#allocation2 + $0x38] sm:$0xff]   ;;  %v783_v2 = vld [vmem:[#allocation2 + $0x30] sm:$0xff]   ;;  %v163_v42 = vlaneseq }
   0xf   :  { %696 = vmatprep.subr.bf16.mxu0 %v869_v0  ;;  %712 = vmatprep.mubr.msk.bf16.mxu0 %vm870_vm0, %v869_v0  ;;  %v784_v3 = vld [vmem:[#allocation2 + $0x28] sm:$0xff]   ;;  %v785_v4 = vld [vmem:[#allocation2 + $0x20] sm:$0xff]   ;;  %v786_v5 = vld [vmem:[#allocation2 + $0x18] sm:$0xff]  }
  0x10   :  { %716 = vmatprep.subr.bf16.mxu1 %v869_v0  ;;  %732 = vmatprep.mubr.msk.bf16.mxu1 %vm870_vm0, %v869_v0  ;;  %v787_v6 = vld [vmem:[#allocation2 + $0x10] sm:$0xff]   ;;  %v788_v7 = vld [vmem:[#allocation2 + $0x8] sm:$0xff]   ;;  %v789_v8 = vld [vmem:[#allocation2] sm:$0xff]   ;;  %v926_v43 = vshrl.u32 %v163_v42, 7 }
  0x11   :  { %697 = vmatpush3.bf16.msra.mxu0 %v782_v1  ;;  %v910_v9 = vld [vmem:[%s969_s0] sm:$0xff]  ;;  %v790_v11 = vld [vmem:[#allocation2 + $0x78] sm:$0xff]   ;;  %v791_v12 = vld [vmem:[#allocation2 + $0x70] sm:$0xff]  }
  0x12   :  { %698 = vmatprep.subr.bf16.mxu0 %v869_v0  ;;  %v32_v10 = vpack.c.bf16 %v910_v9, %v910_v9  ;;  %717 = vmatpush3.bf16.msra.mxu1 %v790_v11  ;;  %v792_v13 = vld [vmem:[#allocation2 + $0x68] sm:$0xff]   ;;  %v793_v14 = vld [vmem:[#allocation2 + $0x60] sm:$0xff]   ;;  %v794_v15 = vld [vmem:[#allocation2 + $0x58] sm:$0xff]   ;;  %v165_v47 = vsub.s32 0, %v926_v43  ;;  %v170_v51 = vsub.s32 4, %v926_v43 }
  0x13   :  { %718 = vmatprep.subr.bf16.mxu1 %v869_v0  ;;  %v795_v16 = vld [vmem:[#allocation2 + $0x50] sm:$0xff]   ;;  %v796_v17 = vld [vmem:[#allocation2 + $0x48] sm:$0xff]   ;;  %v797_v18 = vld [vmem:[#allocation2 + $0x40] sm:$0xff]  }
  0x14   :  { %v931_v44 = vld [vmem:[%s971_s2] sm:$0xff]  ;;  %v798_v59 = vld [vmem:[#allocation2 + $0xb8] sm:$0xff]   ;;  %v799_v60 = vld [vmem:[#allocation2 + $0xb0] sm:$0xff]   ;;  %s871_s2 = smov [#allocation5]  }
  0x15   :  { %699 = vmatpush3.bf16.msra.mxu0 %v783_v2  ;;  %v800_v61 = vld [vmem:[#allocation2 + $0xa8] sm:$0xff]   ;;  %v801_v62 = vld [vmem:[#allocation2 + $0xa0] sm:$0xff]   ;;  %v802_v63 = vld [vmem:[#allocation2 + $0x98] sm:$0xff]   ;;  %s619_s21 = sshll.u32 %s871_s2, 4  ;;  %s620_s21 = int_to_ptr.vmem [resolvable:$true] %s619_s21 }
  0x16   :  { %700 = vmatprep.subr.bf16.mxu0 %v869_v0  ;;  %719 = vmatpush3.bf16.msra.mxu1 %v791_v12  ;;  %v803_v1 = vld [vmem:[#allocation2 + $0x90] sm:$0xff]   ;;  %v804_v2 = vld [vmem:[#allocation2 + $0x88] sm:$0xff]   ;;  %v806_v42 = vld [vmem:[#allocation2 + $0xf8] sm:$0xff]   ;;  %s842_s22 = scalar_lea.vmem %s620_s21, 128  ;;  %p847_p6 = scmp.lt.s32.totalorder %s620_s21, %s620_s21 }
  0x17   :  { %720 = vmatprep.subr.bf16.mxu1 %v869_v0  ;;  %p843_p5 = scmp.ne.s32.totalorder %s620_s21, %s842_s22  ;;  %p848_p7 = scmp.lt.s32.totalorder %s842_s22, %s842_s22 }
  0x19   :  { %701 = vmatpush3.bf16.msra.mxu0 %v784_v3  ;;  %v805_v3 = vld [vmem:[#allocation2 + $0x80] sm:$0xff]   ;;  %p849_p8 = por %p848_p7, %p847_p6 }
  0x1a   :  { %702 = vmatprep.subr.bf16.mxu0 %v869_v0  ;;  %721 = vmatpush3.bf16.msra.mxu1 %v792_v13 }
  0x1b   :  { %722 = vmatprep.subr.bf16.mxu1 %v869_v0  ;;  %p850_p9 = pnand %p849_p8, %p843_p5 }
  0x1d   :  { %703 = vmatpush3.bf16.msra.mxu0 %v785_v4 }
  0x1e   :  { %704 = vmatprep.subr.bf16.mxu0 %v869_v0  ;;  %723 = vmatpush3.bf16.msra.mxu1 %v793_v14 }
  0x1f   :  { %724 = vmatprep.subr.bf16.mxu1 %v869_v0 }
  0x21   :  { %705 = vmatpush3.bf16.msra.mxu0 %v786_v5 }
  0x22   :  { %706 = vmatprep.subr.bf16.mxu0 %v869_v0  ;;  %725 = vmatpush3.bf16.msra.mxu1 %v794_v15 }
  0x23   :  { %726 = vmatprep.subr.bf16.mxu1 %v869_v0 }
  0x25   :  { %707 = vmatpush3.bf16.msra.mxu0 %v787_v6 }
  0x26   :  { %708 = vmatprep.subr.bf16.mxu0 %v869_v0  ;;  %727 = vmatpush3.bf16.msra.mxu1 %v795_v16 }
  0x27   :  { %728 = vmatprep.subr.bf16.mxu1 %v869_v0 }
  0x29   :  { %709 = vmatpush3.bf16.msra.mxu0 %v788_v7 }
  0x2a   :  { %710 = vmatprep.subr.bf16.mxu0 %v869_v0  ;;  %729 = vmatpush3.bf16.msra.mxu1 %v796_v17 }
  0x2b   :  { %730 = vmatprep.subr.bf16.mxu1 %v869_v0 }
  0x2d   :  { %711 = vmatpush3.bf16.msra.mxu0 %v789_v8 }
  0x2e   :  { %736 = vmatprep.subr.bf16.mxu0 %v869_v0  ;;  %731 = vmatpush3.bf16.msra.mxu1 %v797_v18 }
  0x2f   :  { %756 = vmatprep.subr.bf16.mxu1 %v869_v0 }
  0x30   :  { %713 = vmatmul.mubr.bf16.vlgmr.msra.gmra.mxu0 %v32_v10 }
  0x31   :  { %752 = vmatprep.mubr.msk.bf16.mxu0 %vm870_vm0, %v869_v0  ;;  %737 = vmatpush3.bf16.msra.mxu0 %v798_v59 }
  0x32   :  { %738 = vmatprep.subr.bf16.mxu0 %v869_v0 }
  0x35   :  { %739 = vmatpush3.bf16.msra.mxu0 %v799_v60 }
  0x36   :  { %740 = vmatprep.subr.bf16.mxu0 %v869_v0 }
  0x39   :  { %741 = vmatpush3.bf16.msra.mxu0 %v800_v61 }
  0x3a   :  { %742 = vmatprep.subr.bf16.mxu0 %v869_v0 }
  0x3d   :  { %743 = vmatpush3.bf16.msra.mxu0 %v801_v62 }
  0x3e   :  { %744 = vmatprep.subr.bf16.mxu0 %v869_v0 }
  0x41   :  { %745 = vmatpush3.bf16.msra.mxu0 %v802_v63 }
  0x42   :  { %746 = vmatprep.subr.bf16.mxu0 %v869_v0 }
  0x45   :  { %747 = vmatpush3.bf16.msra.mxu0 %v803_v1 }
  0x46   :  { %748 = vmatprep.subr.bf16.mxu0 %v869_v0 }
  0x49   :  { %749 = vmatpush3.bf16.msra.mxu0 %v804_v2 }
  0x4a   :  { %750 = vmatprep.subr.bf16.mxu0 %v869_v0 }
  0x4d   :  { %751 = vmatpush3.bf16.msra.mxu0 %v805_v3 }
  0xf0   :  { %v131_v19 = vpop.f32.mrf.mxu0 }
  0xf1   :  { %v137_v20 = vrot.slane %v131_v19, 4  ;;  %v144_v21 = vmul.f32 %v131_v19, %v131_v19 }
  0xf2   :  { %v714_v22 = vpop.f32.mrf.mxu0 }
  0xf3   :  { %v138_v23 = vadd.f32 %v137_v20, %v131_v19  ;;  %v145_v24 = vrot.slane %v144_v21, 4 }
  0xf4   :  { %v134_v25 = vpop.f32.mrf.mxu0 }
  0xf5   :  { %v139_v26 = vrot.slane %v138_v23, 2  ;;  %v146_v27 = vadd.f32 %v145_v24, %v144_v21 }
  0xf6   :  { %v715_v28 = vpop.f32.mrf.mxu0 }
  0xf7   :  { %v140_v29 = vadd.f32 %v139_v26, %v138_v23  ;;  %v147_v30 = vrot.slane %v146_v27, 2 }
  0xf9   :  { %v141_v31 = vrot.slane %v140_v29, 1  ;;  %v148_v32 = vadd.f32 %v147_v30, %v146_v27  ;;  %v310_v30 = vsub.s32 1, %v926_v43 }
  0xfb   :  { %v142_v33 = vadd.f32 %v141_v31, %v140_v29  ;;  %v149_v34 = vrot.slane %v148_v32, 1 }
  0xfd   :  { %v143_v35 = vmul.f32 0.125, %v142_v33  ;;  %v150_v36 = vadd.f32 %v149_v34, %v148_v32  ;;  %v315_v34 = vsub.s32 5, %v926_v43 }
  0xff   :  { %v151_v37 = vmul.f32 0.125, %v150_v36  ;;  %v152_v38 = vmul.f32 %v143_v35, %v143_v35 }
 0x101   :  { %v153_v39 = vsub.f32 %v151_v37, %v152_v38 }
 0x103   :  { %v154_v40 = vmax.f32 %v153_v39, 0.0 }
 0x105   :  { %v155_v41 = vadd.f32 1e-05, %v154_v40 }
 0x107   :  { %814 = vrsqrt.f32 %v155_v41 }
 0x114   :  { %v815_v45 = vpop.eup %814 }
 0x115   :  { %v157_v46 = vmul.f32 %v815_v45, %v931_v44  ;;  %v807_v45 = vld [vmem:[#allocation2 + $0xf0] sm:$0xff]  }
 0x117   :  { %v158_v48 = vmul.f32 %v157_v46, %v143_v35  ;;  %v166_v50 = vrot.slane %v157_v46, %v165_v47  ;;  %v808_v46 = vld [vmem:[#allocation2 + $0xe8] sm:$0xff]   ;;  %v809_v47 = vld [vmem:[#allocation2 + $0xe0] sm:$0xff]  }
 0x119   :  { %v160_v49 = vrot.slane %v158_v48, 4  ;;  %v167_v53 = vmul.f32 %v166_v50, %v131_v19  ;;  %v810_v48 = vld [vmem:[#allocation2 + $0xd8] sm:$0xff]   ;;  %v812_v50 = vld [vmem:[#allocation2 + $0xc8] sm:$0xff]  }
 0x11b   :  { %v162_v52 = vsub.f32 %v931_v44, %v160_v49  ;;  %v811_v49 = vld [vmem:[#allocation2 + $0xd0] sm:$0xff]  }
 0x11d   :  { %v171_v54 = vrot.slane %v162_v52, %v170_v51  ;;  %v813_v51 = vld [vmem:[#allocation2 + $0xc0] sm:$0xff]  }
 0x11f   :  { %v172_v55 = vadd.f32 %v171_v54, %v167_v53 }
 0x121   :  { %vm173_vm1 = vcmp.gt.f32.partialorder %v172_v55, 0.0  ;;  %v174_v56 = vmul.f32 0.2, %v172_v55 }
 0x123   :  { %v175_v57 = vsel %vm173_vm1, %v172_v55, %v174_v56 }
 0x124   :  { %v176_v58 = vpack.c.bf16 %v175_v57, %v175_v57 }
 0x126   :  { %733 = vmatmul.mubr.bf16.vlgmr.msra.gmra.mxu1 %v176_v58 }
 0x127   :  { %772 = vmatprep.mubr.msk.bf16.mxu1 %vm870_vm0, %v869_v0  ;;  %757 = vmatpush3.bf16.msra.mxu1 %v806_v42 }
 0x128   :  { %758 = vmatprep.subr.bf16.mxu1 %v869_v0 }
 0x12b   :  { %759 = vmatpush3.bf16.msra.mxu1 %v807_v45 }
 0x12c   :  { %760 = vmatprep.subr.bf16.mxu1 %v869_v0 }
 0x12f   :  { %761 = vmatpush3.bf16.msra.mxu1 %v808_v46 }
 0x130   :  { %762 = vmatprep.subr.bf16.mxu1 %v869_v0 }
 0x133   :  { %763 = vmatpush3.bf16.msra.mxu1 %v809_v47 }
 0x134   :  { %764 = vmatprep.subr.bf16.mxu1 %v869_v0 }
 0x137   :  { %765 = vmatpush3.bf16.msra.mxu1 %v810_v48 }
 0x138   :  { %766 = vmatprep.subr.bf16.mxu1 %v869_v0 }
 0x13b   :  { %767 = vmatpush3.bf16.msra.mxu1 %v811_v49 }
 0x13c   :  { %768 = vmatprep.subr.bf16.mxu1 %v869_v0 }
 0x13f   :  { %769 = vmatpush3.bf16.msra.mxu1 %v812_v50 }
 0x140   :  { %770 = vmatprep.subr.bf16.mxu1 %v869_v0 }
 0x143   :  { %771 = vmatpush3.bf16.msra.mxu1 %v813_v51 }
 0x1e6   :  { %v276_v4 = vpop.f32.mrf.mxu1 }
 0x1e7   :  { %v282_v5 = vrot.slane %v276_v4, 4  ;;  %v289_v6 = vmul.f32 %v276_v4, %v276_v4 }
 0x1e8   :  { %v734_v7 = vpop.f32.mrf.mxu1 }
 0x1e9   :  { %v283_v8 = vadd.f32 %v282_v5, %v276_v4  ;;  %v290_v10 = vrot.slane %v289_v6, 4 }
 0x1ea   :  { %v279_v11 = vpop.f32.mrf.mxu1 }
 0x1eb   :  { %v284_v12 = vrot.slane %v283_v8, 2  ;;  %v291_v13 = vadd.f32 %v290_v10, %v289_v6 }
 0x1ec   :  { %v735_v14 = vpop.f32.mrf.mxu1 }
 0x1ed   :  { %v285_v15 = vadd.f32 %v284_v12, %v283_v8  ;;  %v292_v16 = vrot.slane %v291_v13, 2  ;;  %v455_v14 = vsub.s32 2, %v926_v43 }
 0x1ef   :  { %v286_v17 = vrot.slane %v285_v15, 1  ;;  %v293_v18 = vadd.f32 %v292_v16, %v291_v13 }
 0x1f1   :  { %v287_v19 = vadd.f32 %v286_v17, %v285_v15  ;;  %v294_v20 = vrot.slane %v293_v18, 1 }
 0x1f3   :  { %v288_v21 = vmul.f32 0.125, %v287_v19  ;;  %v295_v22 = vadd.f32 %v294_v20, %v293_v18  ;;  %v460_v18 = vsub.s32 6, %v926_v43 }
 0x1f5   :  { %v296_v23 = vmul.f32 0.125, %v295_v22  ;;  %v297_v24 = vmul.f32 %v288_v21, %v288_v21 }
 0x1f7   :  { %v298_v25 = vsub.f32 %v296_v23, %v297_v24 }
 0x1f9   :  { %v299_v26 = vmax.f32 %v298_v25, 0.0 }
 0x1fb   :  { %v300_v27 = vadd.f32 1e-05, %v299_v26 }
 0x1fd   :  { %816 = vrsqrt.f32 %v300_v27 }
 0x20a   :  { %v817_v28 = vpop.eup %816 }
 0x20b   :  { %v302_v29 = vmul.f32 %v817_v28, %v931_v44 }
 0x20d   :  { %v303_v31 = vmul.f32 %v302_v29, %v288_v21  ;;  %v311_v33 = vrot.slane %v302_v29, %v310_v30 }
 0x20f   :  { %v305_v32 = vrot.slane %v303_v31, 4  ;;  %v312_v36 = vmul.f32 %v311_v33, %v276_v4 }
 0x211   :  { %v307_v35 = vsub.f32 %v931_v44, %v305_v32 }
 0x213   :  { %v316_v37 = vrot.slane %v307_v35, %v315_v34 }
 0x215   :  { %v317_v38 = vadd.f32 %v316_v37, %v312_v36 }
 0x217   :  { %vm318_vm2 = vcmp.gt.f32.partialorder %v317_v38, 0.0  ;;  %v319_v39 = vmul.f32 0.2, %v317_v38 }
 0x219   :  { %v320_v40 = vsel %vm318_vm2, %v317_v38, %v319_v39 }
 0x21a   :  { %v321_v41 = vpack.c.bf16 %v320_v40, %v320_v40 }
 0x21c   :  { %753 = vmatmul.mubr.bf16.vlgmr.msra.gmra.mxu0 %v321_v41 }
 0x2dc   :  { %v421_v52 = vpop.f32.mrf.mxu0 }
 0x2dd   :  { %v427_v53 = vrot.slane %v421_v52, 4  ;;  %v434_v54 = vmul.f32 %v421_v52, %v421_v52 }
 0x2de   :  { %v754_v55 = vpop.f32.mrf.mxu0 }
 0x2df   :  { %v428_v56 = vadd.f32 %v427_v53, %v421_v52  ;;  %v435_v57 = vrot.slane %v434_v54, 4  ;;  %v601_v53 = vsub.s32 3, %v926_v43 }
 0x2e0   :  { %v424_v58 = vpop.f32.mrf.mxu0 }
 0x2e1   :  { %v429_v59 = vrot.slane %v428_v56, 2  ;;  %v436_v60 = vadd.f32 %v435_v57, %v434_v54  ;;  %v606_v57 = vsub.s32 7, %v926_v43 }
 0x2e2   :  { %v755_v61 = vpop.f32.mrf.mxu0 }
 0x2e3   :  { %v430_v62 = vadd.f32 %v429_v59, %v428_v56  ;;  %v437_v63 = vrot.slane %v436_v60, 2 }
 0x2e5   :  { %v431_v1 = vrot.slane %v430_v62, 1  ;;  %v438_v2 = vadd.f32 %v437_v63, %v436_v60 }
 0x2e7   :  { %v432_v3 = vadd.f32 %v431_v1, %v430_v62  ;;  %v439_v4 = vrot.slane %v438_v2, 1 }
 0x2e9   :  { %v433_v5 = vmul.f32 0.125, %v432_v3  ;;  %v440_v6 = vadd.f32 %v439_v4, %v438_v2 }
 0x2eb   :  { %v441_v0 = vmul.f32 0.125, %v440_v6  ;;  %v442_v7 = vmul.f32 %v433_v5, %v433_v5 }
 0x2ed   :  { %v443_v8 = vsub.f32 %v441_v0, %v442_v7 }
 0x2ef   :  { %v444_v10 = vmax.f32 %v443_v8, 0.0 }
 0x2f1   :  { %v445_v11 = vadd.f32 1e-05, %v444_v10 }
 0x2f3   :  { %818 = vrsqrt.f32 %v445_v11 }
 0x300   :  { %v819_v12 = vpop.eup %818 }
 0x301   :  { %v447_v13 = vmul.f32 %v819_v12, %v931_v44 }
 0x303   :  { %v448_v15 = vmul.f32 %v447_v13, %v433_v5  ;;  %v456_v17 = vrot.slane %v447_v13, %v455_v14 }
 0x305   :  { %v450_v16 = vrot.slane %v448_v15, 4  ;;  %v457_v20 = vmul.f32 %v456_v17, %v421_v52 }
 0x307   :  { %v452_v19 = vsub.f32 %v931_v44, %v450_v16 }
 0x309   :  { %v461_v21 = vrot.slane %v452_v19, %v460_v18 }
 0x30b   :  { %v462_v22 = vadd.f32 %v461_v21, %v457_v20 }
 0x30d   :  { %v464_v23 = vmul.f32 0.2, %v462_v22  ;;  %vm463_vm3 = vcmp.gt.f32.partialorder %v462_v22, 0.0 }
 0x30f   :  { %v465_v24 = vsel %vm463_vm3, %v462_v22, %v464_v23 }
 0x310   :  { %v466_v25 = vadd.f32 %v465_v24, %v910_v9 }
 0x312   :  { %v467_v26 = vpack.c.bf16 %v466_v25, %v466_v25 }
 0x314   :  { %773 = vmatmul.mubr.bf16.vlgmr.msra.gmra.mxu1 %v467_v26 }
 0x3d4   :  { %v567_v27 = vpop.f32.mrf.mxu1 }
 0x3d5   :  { %v573_v28 = vrot.slane %v567_v27, 4  ;;  %v580_v29 = vmul.f32 %v567_v27, %v567_v27 }
 0x3d6   :  { %v774_v30 = vpop.f32.mrf.mxu1 }
 0x3d7   :  { %v574_v31 = vadd.f32 %v573_v28, %v567_v27  ;;  %v581_v32 = vrot.slane %v580_v29, 4 }
 0x3d8   :  { %v570_v33 = vpop.f32.mrf.mxu1 }
 0x3d9   :  { %v575_v34 = vrot.slane %v574_v31, 2  ;;  %v582_v35 = vadd.f32 %v581_v32, %v580_v29 }
 0x3da   :  { %v775_v36 = vpop.f32.mrf.mxu1 }
 0x3db   :  { %v576_v37 = vadd.f32 %v575_v34, %v574_v31  ;;  %v583_v38 = vrot.slane %v582_v35, 2 }
 0x3dd   :  { %v577_v39 = vrot.slane %v576_v37, 1  ;;  %v584_v40 = vadd.f32 %v583_v38, %v582_v35 }
 0x3df   :  { %v578_v41 = vadd.f32 %v577_v39, %v576_v37  ;;  %v585_v42 = vrot.slane %v584_v40, 1 }
 0x3e1   :  { %v579_v45 = vmul.f32 0.125, %v578_v41  ;;  %v586_v9 = vadd.f32 %v585_v42, %v584_v40 }
 0x3e3   :  { %v587_v46 = vmul.f32 0.125, %v586_v9  ;;  %v588_v47 = vmul.f32 %v579_v45, %v579_v45 }
 0x3e5   :  { %v589_v48 = vsub.f32 %v587_v46, %v588_v47 }
 0x3e7   :  { %v590_v49 = vmax.f32 %v589_v48, 0.0 }
 0x3e9   :  { %v591_v50 = vadd.f32 1e-05, %v590_v49 }
 0x3eb   :  { %820 = vrsqrt.f32 %v591_v50 }
 0x3f8   :  { %v821_v51 = vpop.eup %820 }
 0x3f9   :  { %v593_v52 = vmul.f32 %v821_v51, %v931_v44 }
 0x3fb   :  { %v594_v54 = vmul.f32 %v593_v52, %v579_v45  ;;  %v602_v56 = vrot.slane %v593_v52, %v601_v53 }
 0x3fd   :  { %v596_v55 = vrot.slane %v594_v54, 4  ;;  %v603_v59 = vmul.f32 %v602_v56, %v567_v27 }
 0x3ff   :  { %v598_v58 = vsub.f32 %v931_v44, %v596_v55 }
 0x401   :  { %v607_v60 = vrot.slane %v598_v58, %v606_v57 }
 0x403   :  { %v608_v61 = vadd.f32 %v607_v60, %v603_v59 }
 0x405   :  { %vm609_vm4 = vcmp.gt.f32.partialorder %v608_v61, 0.0  ;;  %v610_v62 = vmul.f32 0.2, %v608_v61 }
 0x407   :  { %v611_v63 = vsel %vm609_vm4, %v608_v61, %v610_v62 }
 0x408   :  { %612 = vst [vmem:[#allocation5] sm:$0xff] %v611_v63 }
 0x409   :  { %853 = shalt.err (!%p850_p9)
}
 0x40a   :  { %622 = dma.vmem_to_hbm [thread:$0]  %s620_s21, 128, %s972_s3, [#allocation4]  }
 0x40b   :  { %864 = dma.done.wait [#allocation4], 128  }
 0x40c   :  { %865 = vsyncadd [#allocation4], 4294967168 }
 0x40d   :  { %626 = vsyncpa [#allocation3], 1 }
 0x40e   :  { %627 = vsyncpa [#allocation4], 1 }

</bundles_post_ra>
